<compile_context>
chip_gen: v5e
topology: v5e:2x2
jax: 0.10.0
libtpu: 0.0.40
codegen_flags: <defaults>
</compile_context>

<pallas_src>
import functools

import numpy as np
import jax
import jax.numpy as jnp
from jax.experimental import pallas as pl
from jax.experimental.pallas import tpu as pltpu


def _round_up(x, m):
    return ((x + m - 1) // m) * m


def _vmem_capacity_bytes():
    try:
        info = pltpu.get_tpu_info()
        for attr in ("vmem_capacity_bytes", "vmem_size_bytes", "vmem_bytes"):
            v = getattr(info, attr, None)
            if v:
                return int(v)
    except Exception:
        pass
    return 64 * 1024 * 1024  # conservative fallback (v7x per-TC VMEM)


_VMEM_CAP = _vmem_capacity_bytes()


# --------------------------------------------------------------------------
# Kernels
# --------------------------------------------------------------------------
def _linear_tiled_kernel(x_ref, w_ref, b_ref, o_ref, acc_ref):
    """Tiled (tm,tk)x(tk,tn) matmul, f32 scratch accumulator, fused bias."""
    k = pl.program_id(2)

    @pl.when(k == 0)
    def _():
        acc_ref[...] = jnp.zeros_like(acc_ref)

    acc_ref[...] += jnp.dot(x_ref[...], w_ref[...],
                            preferred_element_type=jnp.float32)

    @pl.when(k == pl.num_programs(2) - 1)
    def _():
        o_ref[...] = (acc_ref[...] + b_ref[...]).astype(o_ref.dtype)


def _linear_ws_kernel(x_ref, w_ref, b_ref, o_ref):
    """Weight-stationary: whole active weight slab resident in VMEM, one dot
    over the full (active) K per M tile, fused bias."""
    acc = jnp.dot(x_ref[...], w_ref[...], preferred_element_type=jnp.float32)
    o_ref[...] = (acc + b_ref[...]).astype(o_ref.dtype)


# --------------------------------------------------------------------------
# pallas_call wrappers
# --------------------------------------------------------------------------
@functools.partial(jax.jit, static_argnames=("tm", "tn", "tk", "n_out",
                                              "out_dtype", "vmem_limit"))
def _tiled_linear(x_kpad, w_pad, b_pad, *, tm, tn, tk, n_out, out_dtype,
                  vmem_limit):
    M, K = x_kpad.shape
    assert K % tk == 0
    grid = (pl.cdiv(M, tm), pl.cdiv(n_out, tn), K // tk)
    return pl.pallas_call(
        _linear_tiled_kernel,
        out_shape=jax.ShapeDtypeStruct((M, n_out), out_dtype),
        grid=grid,
        in_specs=[
            pl.BlockSpec((tm, tk), lambda i, j, k: (i, k)),
            pl.BlockSpec((tk, tn), lambda i, j, k: (k, j)),
            pl.BlockSpec((1, tn), lambda i, j, k: (0, j)),
        ],
        out_specs=pl.BlockSpec((tm, tn), lambda i, j, k: (i, j)),
        scratch_shapes=[pltpu.VMEM((tm, tn), jnp.float32)],
        compiler_params=pltpu.CompilerParams(
            dimension_semantics=("parallel", "parallel", "arbitrary"),
            vmem_limit_bytes=vmem_limit,
        ),
    )(x_kpad, w_pad, b_pad)


@functools.partial(jax.jit, static_argnames=("tm", "n_span", "n_out",
                                              "out_dtype", "vmem_limit"))
def _ws_linear(x_kpad, w_pad, b_pad, *, tm, n_span, n_out, out_dtype,
               vmem_limit):
    M, K = x_kpad.shape
    grid = (pl.cdiv(M, tm),)
    return pl.pallas_call(
        _linear_ws_kernel,
        out_shape=jax.ShapeDtypeStruct((M, n_out), out_dtype),
        grid=grid,
        in_specs=[
            pl.BlockSpec((tm, K), lambda i: (i, 0)),
            pl.BlockSpec((K, n_span), lambda i: (0, 0)),   # resident weight
            pl.BlockSpec((1, n_span), lambda i: (0, 0)),
        ],
        out_specs=pl.BlockSpec((tm, n_span), lambda i: (i, 0)),
        compiler_params=pltpu.CompilerParams(
            dimension_semantics=("parallel",),
            vmem_limit_bytes=vmem_limit,
        ),
    )(x_kpad, w_pad, b_pad)


# --------------------------------------------------------------------------
# Module wrapper
# --------------------------------------------------------------------------
class DynamicLinearLayer:
    """JAX/Pallas port of the PyTorch DynamicLinearLayer (forward only)."""

    def __init__(self, in_features_list, out_features, bias=True, key=None,
                 param_dtype=jnp.bfloat16, tile_m=512):
        if isinstance(in_features_list, int):
            in_features_list = [in_features_list]
        self.in_features_list = list(in_features_list)
        self.out_features = int(out_features)
        self.use_bias = bool(bias)
        self.param_dtype = param_dtype
        self.max_in_features = max(self.in_features_list)
        max_in = self.max_in_features
        self._tile_m = int(tile_m)

        if key is None:
            key = jax.random.PRNGKey(42)
        k_w, k_b = jax.random.split(key)
        bound = 1.0 / float(max_in) ** 0.5
        # Canonical parameter in torch layout (out, max_in); stored in bf16.
        self.weight = jax.random.uniform(
            k_w, (self.out_features, max_in), jnp.float32, -bound, bound
        ).astype(param_dtype)
        if self.use_bias:
            self.bias = jax.random.uniform(
                k_b, (self.out_features,), jnp.float32, -bound, bound)
        else:
            self.bias = None

        # One-time layout work: transpose to (in, out) and zero-pad to 256
        # multiples (full MXU width on v6e/v7x, fine on v5e).  Extra K rows
        # are zero so zero-padded x columns reproduce W[:, :in_features].
        self._k_pad = _round_up(max_in, 256)
        self._n_pad = _round_up(self.out_features, 256)
        # 256-aligned tiles; use 512 only when it divides the padded dim and
        # leaves >=2 N blocks (keep both v7x TensorCores busy).
        self._tk = 512 if (self._k_pad % 512 == 0 and self._k_pad >= 2048) else 256
        self._tn = 512 if (self._n_pad % 512 == 0 and self._n_pad >= 1024) else 256

        w_t = self.weight.T  # (max_in, out), bf16, done once
        self._w_padded = jnp.pad(
            w_t, ((0, self._k_pad - max_in), (0, self._n_pad - self.out_features)))
        if self.use_bias:
            b = self.bias
        else:
            b = jnp.zeros((self.out_features,), jnp.float32)
        self._b_padded = jnp.pad(
            b.astype(jnp.float32), (0, self._n_pad - self.out_features)
        ).reshape(1, self._n_pad)

    def __call__(self, x, out_features=None, force_tiled=False):
        if out_features is None:
            out_features = self.out_features
        assert out_features <= self.out_features, "out_features exceeds layer width"
        out_dtype = x.dtype
        lead = x.shape[:-1]
        in_features = x.shape[-1]
        assert in_features <= self.max_in_features, "in_features exceeds layer width"

        # NOTE: activations are quantized to bf16 (weights are bf16); accumulate f32.
        x2 = x.reshape(-1, in_features).astype(self.param_dtype)
        rows = x2.shape[0]

        # K grid covers only the active width; zero K-tail pad keeps the
        # reduction exact against the real weight rows in [in_features, ...).
        tk = self._tk
        k_active = _round_up(in_features, tk)          # <= self._k_pad (tk | k_pad)
        if k_active > in_features:
            x2 = jnp.pad(x2, ((0, 0), (0, k_active - in_features)))

        # tm bucketed to powers of two: few recompiles, >=16 for bf16 packing.
        tm = min(self._tile_m, max(16, pl.next_power_of_2(max(rows, 1))))

        out_bytes = np.dtype(out_dtype).itemsize
        n_span = _round_up(out_features, 256)           # <= self._n_pad

        # Weight-stationary path if the active weight slab + tiles fit VMEM
        # comfortably on this generation (W read from HBM exactly once).
        ws_bytes = (2 * k_active * n_span * 2
                    + 2 * tm * k_active * 2
                    + 2 * tm * n_span * out_bytes
                    + 2 * n_span * 4)
        use_ws = (not force_tiled) and ws_bytes <= int(0.55 * _VMEM_CAP)

        if use_ws:
            vmem_limit = min(int(0.9 * _VMEM_CAP),
                             max(32 << 20, ws_bytes + (4 << 20)))
            y = _ws_linear(x2, self._w_padded, self._b_padded,
                           tm=tm, n_span=n_span, n_out=out_features,
                           out_dtype=out_dtype, vmem_limit=vmem_limit)
        else:
            tn = self._tn
            ws_tiled = (2 * tm * tk * 2 + 2 * tk * tn * 2
                        + 2 * tm * tn * out_bytes + tm * tn * 4 + 2 * tn * 4)
            vmem_limit = min(int(0.9 * _VMEM_CAP),
                             max(32 << 20, ws_tiled + (4 << 20)))
            y = _tiled_linear(x2, self._w_padded, self._b_padded,
                              tm=tm, tn=tn, tk=tk, n_out=out_features,
                              out_dtype=out_dtype, vmem_limit=vmem_limit)

        return y.reshape(*lead, out_features)


# --------------------------------------------------------------------------
# Reference + test
# --------------------------------------------------------------------------
def _reference(x, layer, out_f):
    # Reference with the same bf16 quantization the kernel sees.
    in_f = x.shape[-1]
    w_q = layer.weight.astype(jnp.float32)[:out_f, :in_f]
    x_q = x.astype(jnp.bfloat16).astype(jnp.float32)
    y = jnp.einsum("...k,nk->...n", x_q, w_q,
                   precision=jax.lax.Precision.HIGHEST)
    if layer.use_bias:
        y = y + layer.bias[:out_f]
    return y


if __name__ == "__main__":
    key = jax.random.PRNGKey(0)
    k_x, k_x2, k_layer = jax.random.split(key, 3)

    in_features_list = [16, 24, 32]
    out_features = 32

    layer = DynamicLinearLayer(in_features_list, out_features, bias=True,
                               key=k_layer)

    # Active sub-network width 24, 3-D input (taken from the input's last dim).
    x = jax.random.normal(k_x, (2, 4, 24), jnp.float32)
    y = jax.block_until_ready(layer(x))
    y_ref = _reference(x, layer, out_features)
    assert y.shape == (2, 4, out_features)
    assert jnp.allclose(y, y_ref, atol=1e-4, rtol=1e-4), "mismatch (in=24, WS path)"

    # Second active width (16) reuses the same compiled kernel (same k_active).
    x2 = jax.random.normal(k_x2, (8, 16), jnp.float32)
    y2 = jax.block_until_ready(layer(x2))
    y2_ref = _reference(x2, layer, out_features)
    assert jnp.allclose(y2, y2_ref, atol=1e-4, rtol=1e-4), "mismatch (in=16, WS path)"

    # Exercise the tiled (k-loop) path as well.
    y3 = jax.block_until_ready(layer(x, force_tiled=True))
    assert jnp.allclose(y3, y_ref, atol=1e-4, rtol=1e-4), "mismatch (tiled path)"

    print("KERNEL_OK")
</pallas_src>

<mosaic_0001>
module attributes {stable_mosaic.version = 11 : i64} {
  func.func @_linear_ws_kernel(%arg0: i32, %arg1: memref<16x256xbf16, #tpu.memory_space<vmem>>, %arg2: memref<256x256xbf16, #tpu.memory_space<vmem>>, %arg3: memref<1x256xf32, #tpu.memory_space<vmem>>, %arg4: memref<16x256xf32, #tpu.memory_space<vmem>>) attributes {dimension_semantics = [#tpu.dimension_semantics<parallel>], iteration_bounds = array<i64: 1>, scalar_prefetch = 0 : i64, scratch_operands = 0 : i64, tpu.core_type = #tpu.core_type<tc>, window_params = [{transform_indices = @transform_0, window_bounds = array<i64: 16, 256>}, {pipeline_mode = #tpu.pipeline_mode<synchronous>, transform_indices = @transform_1, window_bounds = array<i64: 256, 256>}, {pipeline_mode = #tpu.pipeline_mode<synchronous>, transform_indices = @transform_2, window_bounds = array<i64: 1, 256>}, {transform_indices = @transform_3, window_bounds = array<i64: 16, 256>}]} {
    %c0 = arith.constant 0 : index
    %c0_0 = arith.constant 0 : index
    %0 = vector.load %arg1[%c0, %c0_0] : memref<16x256xbf16, #tpu.memory_space<vmem>>, vector<16x256xbf16>
    %c0_1 = arith.constant 0 : index
    %c0_2 = arith.constant 0 : index
    %1 = vector.load %arg2[%c0_1, %c0_2] : memref<256x256xbf16, #tpu.memory_space<vmem>>, vector<256x256xbf16>
    %cst = arith.constant dense<0.000000e+00> : vector<16x256xf32>
    %2 = tpu.matmul %0, %1, %cst {dimension_numbers = #tpu.dot_dimension_numbers<[1], [0], [0], [1], [0, 0, 1, 1], [], []>} : vector<16x256xbf16>, vector<256x256xbf16>, vector<16x256xf32> -> vector<16x256xf32>
    %c0_3 = arith.constant 0 : index
    %c0_4 = arith.constant 0 : index
    %3 = vector.load %arg3[%c0_3, %c0_4] : memref<1x256xf32, #tpu.memory_space<vmem>>, vector<1x256xf32>
    %4 = vector.broadcast %3 : vector<1x256xf32> to vector<16x256xf32>
    %5 = arith.addf %2, %4 : vector<16x256xf32>
    %c0_5 = arith.constant 0 : index
    %c0_6 = arith.constant 0 : index
    %6 = vector.load %arg4[%c0_5, %c0_6] : memref<16x256xf32, #tpu.memory_space<vmem>>, vector<16x256xf32>
    tpu.vector_store %arg4[%c0_5, %c0_6], %5 {strides = array<i32>} : memref<16x256xf32, #tpu.memory_space<vmem>>, vector<16x256xf32>,
    return
  }
  func.func @transform_0(%arg0: i32) -> (i32, i32) {
    %c0_i32 = arith.constant 0 : i32
    %c0_i32_0 = arith.constant 0 : i32
    return %arg0, %c0_i32 : i32, i32
  }
  func.func @transform_1(%arg0: i32) -> (i32, i32) {
    %c0_i32 = arith.constant 0 : i32
    %c0_i32_0 = arith.constant 0 : i32
    %c0_i32_1 = arith.constant 0 : i32
    return %c0_i32, %c0_i32_0 : i32, i32
  }
  func.func @transform_2(%arg0: i32) -> (i32, i32) {
    %c0_i32 = arith.constant 0 : i32
    %c0_i32_0 = arith.constant 0 : i32
    %c0_i32_1 = arith.constant 0 : i32
    return %c0_i32, %c0_i32_0 : i32, i32
  }
  func.func @transform_3(%arg0: i32) -> (i32, i32) {
    %c0_i32 = arith.constant 0 : i32
    %c0_i32_0 = arith.constant 0 : i32
    return %arg0, %c0_i32 : i32, i32
  }
}

</mosaic_0001>

<bundles_post_ra>
// kernel: _ws_linear.1
= control target key start
LH: loop header
LB: loop body
LE: loop exit
PB: predicated region body
PF: predicated region fallthrough
CT: control target
= control target key end

     0   :  { %8 = vsyncpa [#allocation3], 0  ;;  %s676_s0 = inlined_call_operand.hbm [shape: bf16[8,256], index: 0, kind: input, shape index: {}]   ;;  %s677_s1 = inlined_call_operand.hbm [shape: bf16[256,256], index: 1, kind: input, shape index: {}]   ;;  %s678_s2 = inlined_call_operand.hbm [shape: f32[1,256], index: 2, kind: input, shape index: {}]   ;;  %s679_s3 = inlined_call_operand.hbm [shape: f32[8,32], index: 3, kind: output, shape index: {}]  }
   0x1   :  { %9 = vsyncpa [#allocation6], 0 }
   0x2   :  { %10 = vsyncpa [#allocation4], 0 }
   0x3   :  { %14 = vsyncadd [#allocation3], 128  ;;  %s28_s14 = sshll.u32 %s677_s1, 4  ;;  %s629_s15 = smov [#allocation5]   ;;  %s29_s14 = int_to_ptr.hbm [resolvable:$true] %s28_s14 }
   0x4   :  { %s30_s16 = sshll.u32 %s629_s15, 4  ;;  %s15_s19 = sshll.u32 %s676_s0, 4  ;;  %s31_s16 = int_to_ptr.vmem [resolvable:$true] %s30_s16  ;;  %s16_s19 = int_to_ptr.hbm [resolvable:$true] %s15_s19 }
   0x5   :  { %s630_s20 = smov 128   ;;  %s631_s21 = smov 8  }
   0x6   :  { %36 = dma.hbm_to_vmem [thread:$0]  %s29_s14, 4096, %s31_s16, [#allocation6], %s630_s20, %s630_s20, %s631_s21  }
   0x7   :  { %s632_s22 = smov [#allocation2]   ;;  %s42_s1 = sshll.u32 %s678_s2, 4  ;;  %s43_s1 = int_to_ptr.hbm [resolvable:$true] %s42_s1 }
   0x8   :  { %s17_s23 = sshll.u32 %s632_s22, 4  ;;  %s633_s0 = smov [#allocation7]   ;;  %s18_s23 = int_to_ptr.vmem [resolvable:$true] %s17_s23 }
   0x9   :  { %23 = dma.hbm_to_vmem [thread:$0]  %s16_s19, 128, %s18_s23, [#allocation3], %s630_s20, %s630_s20, %s631_s21  }
   0xa   :  { %s44_s26 = sshll.u32 %s633_s0, 4  ;;  %s45_s26 = int_to_ptr.vmem [resolvable:$true] %s44_s26 }
   0xb   :  { %47 = dma.hbm_to_vmem [thread:$0]  %s43_s1, 32, %s45_s26, [#allocation6]  }
   0xc   :  { %623 = dma.done.wait [#allocation3], 256  }
   0xd   :  { %624 = vsyncadd [#allocation3], 4294967040 }
   0xe   :  { %625 = dma.done.wait [#allocation6], 4128  }
   0xf   :  { %626 = vsyncadd [#allocation6], 4294963168  ;;  %v416_v0 = vld [vmem:[#allocation5 + $0x70] sm:$0xf]  ;;  %v503_v1 = vld [vmem:[#allocation5 + $0x74] sm:$0xf0] }
  0x10   :  { %v480_v2 = vld [vmem:[#allocation5 + $0xf0] sm:$0xf]  ;;  %v417_v3 = vor.u32 %v503_v1, %v416_v0  ;;  %v519_v4 = vld [vmem:[#allocation5 + $0xf4] sm:$0xf0]  ;;  %v502_v5 = vld [vmem:[#allocation5 + $0x74] sm:$0xf] }
  0x11   :  { %v418_v6 = vld [vmem:[#allocation5 + $0x78] sm:$0xf0]  ;;  %v481_v7 = vor.u32 %v519_v4, %v480_v2  ;;  %v518_v9 = vld [vmem:[#allocation5 + $0xf4] sm:$0xf]  ;;  %v408_v11 = vld [vmem:[#allocation5 + $0x60] sm:$0xf] }
  0x12   :  { %v421_v8 = vor.u32 %v502_v5, %v418_v6  ;;  %v482_v10 = vld [vmem:[#allocation5 + $0xf8] sm:$0xf0]  ;;  %270 = vmatpush.bf16.msra.mxu0 %v417_v3  ;;  %v501_v13 = vld [vmem:[#allocation5 + $0x64] sm:$0xf0]  ;;  %v472_v14 = vld [vmem:[#allocation5 + $0xe0] sm:$0xf] }
  0x13   :  { %v485_v12 = vor.u32 %v518_v9, %v482_v10  ;;  %v517_v15 = vld [vmem:[#allocation5 + $0xe4] sm:$0xf0]  ;;  %284 = vmatpush.bf16.msra.mxu1 %v481_v7  ;;  %v409_v16 = vor.u32 %v501_v13, %v408_v11  ;;  %v500_v18 = vld [vmem:[#allocation5 + $0x64] sm:$0xf]  ;;  %v410_v19 = vld [vmem:[#allocation5 + $0x68] sm:$0xf0] }
  0x14   :  { %298 = vmatpush.bf16.msra.mxu2 %v421_v8  ;;  %v473_v17 = vor.u32 %v517_v15, %v472_v14  ;;  %v516_v20 = vld [vmem:[#allocation5 + $0xe4] sm:$0xf]  ;;  %v413_v21 = vor.u32 %v500_v18, %v410_v19  ;;  %v474_v22 = vld [vmem:[#allocation5 + $0xe8] sm:$0xf0]  ;;  %v400_v23 = vld [vmem:[#allocation5 + $0x50] sm:$0xf] }
  0x15   :  { %312 = vmatpush.bf16.msra.mxu3 %v485_v12  ;;  %v499_v24 = vld [vmem:[#allocation5 + $0x54] sm:$0xf0]  ;;  %v477_v25 = vor.u32 %v516_v20, %v474_v22  ;;  %v464_v26 = vld [vmem:[#allocation5 + $0xd0] sm:$0xf]  ;;  %v498_v28 = vld [vmem:[#allocation5 + $0x54] sm:$0xf] }
  0x16   :  { %v515_v27 = vld [vmem:[#allocation5 + $0xd4] sm:$0xf0]  ;;  %271 = vmatpush.bf16.msra.mxu0 %v409_v16  ;;  %v401_v29 = vor.u32 %v499_v24, %v400_v23  ;;  %v402_v30 = vld [vmem:[#allocation5 + $0x58] sm:$0xf0]  ;;  %v514_v31 = vld [vmem:[#allocation5 + $0xd4] sm:$0xf] }
  0x17   :  { %v466_v32 = vld [vmem:[#allocation5 + $0xd8] sm:$0xf0]  ;;  %285 = vmatpush.bf16.msra.mxu1 %v473_v17  ;;  %v465_v33 = vor.u32 %v515_v27, %v464_v26  ;;  %v405_v34 = vor.u32 %v498_v28, %v402_v30  ;;  %v392_v35 = vld [vmem:[#allocation5 + $0x40] sm:$0xf]  ;;  %v497_v36 = vld [vmem:[#allocation5 + $0x44] sm:$0xf0] }
  0x18   :  { %299 = vmatpush.bf16.msra.mxu2 %v413_v21  ;;  %v456_v37 = vld [vmem:[#allocation5 + $0xc0] sm:$0xf]  ;;  %v469_v38 = vor.u32 %v514_v31, %v466_v32  ;;  %v513_v39 = vld [vmem:[#allocation5 + $0xc4] sm:$0xf0]  ;;  %v496_v40 = vld [vmem:[#allocation5 + $0x44] sm:$0xf]  ;;  %v393_v44 = vor.u32 %v497_v36, %v392_v35 }
  0x19   :  { %313 = vmatpush.bf16.msra.mxu3 %v477_v25  ;;  %v394_v41 = vld [vmem:[#allocation5 + $0x48] sm:$0xf0]  ;;  %v512_v42 = vld [vmem:[#allocation5 + $0xc4] sm:$0xf]  ;;  %v457_v45 = vor.u32 %v513_v39, %v456_v37  ;;  %v384_v47 = vld [vmem:[#allocation5 + $0x30] sm:$0xf] }
  0x1a   :  { %v458_v43 = vld [vmem:[#allocation5 + $0xc8] sm:$0xf0]  ;;  %272 = vmatpush.bf16.msra.mxu0 %v401_v29  ;;  %v397_v46 = vor.u32 %v496_v40, %v394_v41  ;;  %v495_v48 = vld [vmem:[#allocation5 + $0x34] sm:$0xf0]  ;;  %v448_v49 = vld [vmem:[#allocation5 + $0xb0] sm:$0xf] }
  0x1b   :  { %286 = vmatpush.bf16.msra.mxu1 %v465_v33  ;;  %v461_v50 = vor.u32 %v512_v42, %v458_v43  ;;  %v511_v51 = vld [vmem:[#allocation5 + $0xb4] sm:$0xf0]  ;;  %v494_v52 = vld [vmem:[#allocation5 + $0x34] sm:$0xf]  ;;  %v386_v53 = vld [vmem:[#allocation5 + $0x38] sm:$0xf0]  ;;  %v385_v56 = vor.u32 %v495_v48, %v384_v47 }
  0x1c   :  { %300 = vmatpush.bf16.msra.mxu2 %v405_v34  ;;  %v510_v54 = vld [vmem:[#allocation5 + $0xb4] sm:$0xf]  ;;  %v450_v55 = vld [vmem:[#allocation5 + $0xb8] sm:$0xf0]  ;;  %v449_v57 = vor.u32 %v511_v51, %v448_v49  ;;  %v389_v58 = vor.u32 %v494_v52, %v386_v53  ;;  %v376_v59 = vld [vmem:[#allocation5 + $0x20] sm:$0xf] }
  0x1d   :  { %314 = vmatpush.bf16.msra.mxu3 %v469_v38  ;;  %v493_v60 = vld [vmem:[#allocation5 + $0x24] sm:$0xf0]  ;;  %v440_v61 = vld [vmem:[#allocation5 + $0xa0] sm:$0xf]  ;;  %v453_v62 = vor.u32 %v510_v54, %v450_v55  ;;  %v492_v0 = vld [vmem:[#allocation5 + $0x24] sm:$0xf] }
  0x1e   :  { %273 = vmatpush.bf16.msra.mxu0 %v393_v44  ;;  %v509_v63 = vld [vmem:[#allocation5 + $0xa4] sm:$0xf0]  ;;  %v378_v1 = vld [vmem:[#allocation5 + $0x28] sm:$0xf0]  ;;  %v508_v2 = vld [vmem:[#allocation5 + $0xa4] sm:$0xf]  ;;  %v377_v4 = vor.u32 %v493_v60, %v376_v59 }
  0x1f   :  { %287 = vmatpush.bf16.msra.mxu1 %v457_v45  ;;  %v442_v3 = vld [vmem:[#allocation5 + $0xa8] sm:$0xf0]  ;;  %v441_v5 = vor.u32 %v509_v63, %v440_v61  ;;  %v381_v6 = vor.u32 %v492_v0, %v378_v1  ;;  %v368_v7 = vld [vmem:[#allocation5 + $0x10] sm:$0xf]  ;;  %v491_v8 = vld [vmem:[#allocation5 + $0x14] sm:$0xf0] }
  0x20   :  { %301 = vmatpush.bf16.msra.mxu2 %v397_v46  ;;  %v432_v9 = vld [vmem:[#allocation5 + $0x90] sm:$0xf]  ;;  %v445_v10 = vor.u32 %v508_v2, %v442_v3  ;;  %v507_v11 = vld [vmem:[#allocation5 + $0x94] sm:$0xf0]  ;;  %v490_v12 = vld [vmem:[#allocation5 + $0x14] sm:$0xf]  ;;  %v369_v16 = vor.u32 %v491_v8, %v368_v7 }
  0x21   :  { %315 = vmatpush.bf16.msra.mxu3 %v461_v50  ;;  %v370_v13 = vld [vmem:[#allocation5 + $0x18] sm:$0xf0]  ;;  %v506_v14 = vld [vmem:[#allocation5 + $0x94] sm:$0xf]  ;;  %v433_v17 = vor.u32 %v507_v11, %v432_v9  ;;  %v360_v19 = vld [vmem:[#allocation5] sm:$0xf] }
  0x22   :  { %274 = vmatpush.bf16.msra.mxu0 %v385_v56  ;;  %v434_v15 = vld [vmem:[#allocation5 + $0x98] sm:$0xf0]  ;;  %v373_v18 = vor.u32 %v490_v12, %v370_v13  ;;  %v489_v20 = vld [vmem:[#allocation5 + $0x4] sm:$0xf0]  ;;  %v424_v21 = vld [vmem:[#allocation5 + $0x80] sm:$0xf] }
  0x23   :  { %288 = vmatpush.bf16.msra.mxu1 %v449_v57  ;;  %v437_v22 = vor.u32 %v506_v14, %v434_v15  ;;  %v505_v23 = vld [vmem:[#allocation5 + $0x84] sm:$0xf0]  ;;  %v488_v24 = vld [vmem:[#allocation5 + $0x4] sm:$0xf]  ;;  %v362_v25 = vld [vmem:[#allocation5 + $0x8] sm:$0xf0]  ;;  %v361_v28 = vor.u32 %v489_v20, %v360_v19 }
  0x24   :  { %302 = vmatpush.bf16.msra.mxu2 %v389_v58  ;;  %v504_v26 = vld [vmem:[#allocation5 + $0x84] sm:$0xf]  ;;  %v426_v27 = vld [vmem:[#allocation5 + $0x88] sm:$0xf0]  ;;  %v352_v29 = vld [vmem:[#allocation2] sm:$0xf]  ;;  %v425_v31 = vor.u32 %v505_v23, %v424_v21  ;;  %v365_v32 = vor.u32 %v488_v24, %v362_v25 }
  0x25   :  { %316 = vmatpush.bf16.msra.mxu3 %v453_v62  ;;  %v487_v30 = vld [vmem:[#allocation2 + $0x4] sm:$0xf0]  ;;  %v486_v33 = vld [vmem:[#allocation2 + $0x4] sm:$0xf]  ;;  %v354_v34 = vld [vmem:[#allocation2 + $0x8] sm:$0xf0]  ;;  %v429_v35 = vor.u32 %v504_v26, %v426_v27 }
  0x26   :  { %275 = vmatpush.bf16.msra.mxu0 %v377_v4  ;;  %v353_v36 = vor.u32 %v487_v30, %v352_v29  ;;  %v357_v37 = vor.u32 %v486_v33, %v354_v34  ;;  %v94_v38 = vld [vmem:[#allocation7] sm:$0x3] }
  0x27   :  { %289 = vmatpush.bf16.msra.mxu1 %v441_v5  ;;  %v96_v39 = vperm.slane %v94_v38, 0  ;;  %v97_v44 = vperm.slane %v94_v38, 1 }
  0x28   :  { %303 = vmatpush.bf16.msra.mxu2 %v381_v6 }
  0x29   :  { %317 = vmatpush.bf16.msra.mxu3 %v445_v10 }
  0x2a   :  { %276 = vmatpush.bf16.msra.mxu0 %v369_v16 }
  0x2b   :  { %290 = vmatpush.bf16.msra.mxu1 %v433_v17 }
  0x2c   :  { %304 = vmatpush.bf16.msra.mxu2 %v373_v18 }
  0x2d   :  { %318 = vmatpush.bf16.msra.mxu3 %v437_v22 }
  0x2e   :  { %277 = vmatpush.bf16.msra.mxu0 %v361_v28 }
  0x2f   :  { %291 = vmatpush.bf16.msra.mxu1 %v425_v31 }
  0x30   :  { %305 = vmatpush.bf16.msra.mxu2 %v365_v32 }
  0x31   :  { %319 = vmatpush.bf16.msra.mxu3 %v429_v35  ;;  %278 = vmatmul.bf16.vlgmr.msra.gmra.mxu0 %v353_v36 }
  0x32   :  { %292 = vmatmul.bf16.vlgmr.msra.gmra.mxu1 %v357_v37 }
  0x33   :  { %306 = vmatmul.bf16.vlgmr.msra.gmra.mxu2 %v353_v36 }
  0x34   :  { %320 = vmatmul.bf16.vlgmr.msra.gmra.mxu3 %v357_v37 }
  0xae   :  { %v279_v40 = vpop.f32.mrf.mxu0 }
  0xaf   :  { %v280_v41 = vadd.f32 %v279_v40, %v96_v39  ;;  %v293_v42 = vpop.f32.mrf.mxu1 }
  0xb1   :  { %v294_v43 = vadd.f32 %v293_v42, %v280_v41 }
  0xb3   :  { %326 = vst [vmem:[#allocation8] sm:$0xff] %v294_v43 }
  0xb6   :  { %v307_v45 = vpop.f32.mrf.mxu2  ;;  %v281_v48 = vpop.f32.mrf.mxu0 }
  0xb7   :  { %v308_v46 = vadd.f32 %v307_v45, %v97_v44  ;;  %v321_v47 = vpop.f32.mrf.mxu3  ;;  %v282_v49 = vadd.f32 %v281_v48, %v96_v39  ;;  %v295_v51 = vpop.f32.mrf.mxu1 }
  0xb9   :  { %v322_v50 = vadd.f32 %v321_v47, %v308_v46  ;;  %v296_v52 = vadd.f32 %v295_v51, %v282_v49 }
  0xbb   :  { %327 = vst [vmem:[#allocation8 + $0x8] sm:$0xff] %v322_v50 }
  0xbc   :  { %328 = vst [vmem:[#allocation8 + $0x10] sm:$0xff] %v296_v52 }
  0xbe   :  { %v309_v53 = vpop.f32.mrf.mxu2 }
  0xbf   :  { %v310_v54 = vadd.f32 %v309_v53, %v97_v44  ;;  %v323_v55 = vpop.f32.mrf.mxu3 }
  0xc1   :  { %v324_v56 = vadd.f32 %v323_v55, %v310_v54 }
  0xc3   :  { %329 = vst [vmem:[#allocation8 + $0x18] sm:$0xff] %v324_v56 }
  0xc4   :  { %333 = vsyncadd [#allocation4], 384  ;;  %s336_s28 = sshll.u32 %s679_s3, 4  ;;  %s634_s29 = smov [#allocation8]   ;;  %s337_s28 = int_to_ptr.hbm [resolvable:$true] %s336_s28 }
  0xc5   :  { %s334_s30 = sshll.u32 %s634_s29, 4  ;;  %s635_s4 = smov 256   ;;  %s335_s30 = int_to_ptr.vmem [resolvable:$true] %s334_s30 }
  0xc6   :  { %342 = dma.vmem_to_hbm [thread:$0]  %s335_s30, 128, %s337_s28, [#allocation4], %s635_s4, %s630_s20, %s631_s21  }
  0xc7   :  { %627 = dma.done.wait [#allocation4], 512  }
  0xc8   :  { %628 = vsyncadd [#allocation4], 4294966784 }
  0xc9   :  { %347 = vsyncpa [#allocation3], 1 }
  0xca   :  { %348 = vsyncpa [#allocation6], 1 }
  0xcb   :  { %349 = vsyncpa [#allocation4], 1 }

</bundles_post_ra>
